<compile_context>
chip_gen: v5e
topology: v5e:2x2
jax: 0.10.0
libtpu: 0.0.40
codegen_flags: <defaults>
</compile_context>

<pallas_src>
import functools
import math

import jax
import jax.numpy as jnp
from jax.experimental import pallas as pl
from jax.experimental.pallas import tpu as pltpu


def _region_mha_kernel(num_heads, compute_dtype,
                       qpoi_ref, qsvi_ref, k_ref, v_ref, mask_ref,
                       bm_ref, seg_ref,
                       wqp_ref, bqp_ref, wqs_ref, bqs_ref,
                       wk_ref, bk_ref, wv_ref, bv_ref,
                       wfc_ref, bfc_ref,
                       out_ref):
    Bn, Sq, D = qpoi_ref.shape
    Sk = k_ref.shape[1]
    H = num_heads
    Sq2 = 2 * Sq                 # fused poi+svi query rows per batch element
    M = Bn * Sq2                 # total fused rows this grid step
    HSk = H * Sk                 # head-major score lanes
    f32 = jnp.float32
    ct = jnp.dtype(compute_dtype)          # MXU operand dtype (bf16 fast path / f32 test)
    approx_recip = ct != jnp.dtype(jnp.float32)

    # ---- Input projections: fold (Bn, S) into one MXU M dimension ----
    def proj(x_ref, w_ref, b_ref, rows):
        x = x_ref[...].reshape(rows, D).astype(ct)
        y = jnp.dot(x, w_ref[...], preferred_element_type=f32) + b_ref[...]
        return y.astype(ct)

    # 1/sqrt(dk) is already folded into wq_poi / wq_svi (weights AND biases) in the wrapper.
    qp = proj(qpoi_ref, wqp_ref, bqp_ref, Bn * Sq).reshape(Bn, Sq, D)
    qs = proj(qsvi_ref, wqs_ref, bqs_ref, Bn * Sq).reshape(Bn, Sq, D)
    k = proj(k_ref, wk_ref, bk_ref, Bn * Sk).reshape(Bn, Sk, D)       # (Bn, Sk, D)
    v = proj(v_ref, wv_ref, bv_ref, Bn * Sk).reshape(Bn, Sk, D)       # (Bn, Sk, D)

    # Fuse the two query streams along the row axis: rows [0:Sq) = poi, [Sq:2Sq) = svi.
    q = jnp.concatenate([qp, qs], axis=1)                             # (Bn, 2Sq, D)

    # Block-diagonal head batching: tile K/V H times along rows and mask each copy to a
    # single head's D-columns.  One batched matmul then computes every head's scores.
    bm = bm_ref[...]                                                  # (HSk, D), 0/1 in ct
    k_bd = jnp.concatenate([k] * H, axis=1) * bm                      # (Bn, HSk, D)
    v_bd = jnp.concatenate([v] * H, axis=1) * bm                      # (Bn, HSk, D)

    # Scores for all heads in ONE dot_general (contraction K = D).
    s = jnp.einsum('bqd,bkd->bqk', q, k_bd,
                   preferred_element_type=f32)                        # (Bn, 2Sq, HSk)
    s = s + mask_ref[...]                                             # additive mask (f32)

    # Softmax per head.  A single per-row max (shared by all heads) is a valid shift; the
    # per-head denominator comes from one matmul against a block-of-ones matrix, which
    # also broadcasts it back across each head's Sk lanes.
    m = jnp.max(s, axis=-1, keepdims=True)                            # (Bn, 2Sq, 1)
    p = jnp.exp(s - m)                                                # f32, unnormalized
    p2 = p.reshape(M, HSk)
    l2 = jnp.dot(p2.astype(ct), seg_ref[...],
                 preferred_element_type=f32)                          # (M, HSk), per-head sums
    l2 = jnp.maximum(l2, jnp.float32(1e-30))                          # guard fully-underflowed heads
    # TODO(synk): nn.Dropout on attention probs omitted (eval-mode identity).
    pn = (p2 * pl.reciprocal(l2, approx=approx_recip)).astype(ct)     # normalized probs (ct)
    pn = pn.reshape(Bn, Sq2, HSk)

    # Head outputs for all heads in ONE dot_general; the block mask on V places each
    # head's output in its own D-columns (the fc "concat heads" layout).
    o = jnp.einsum('bqk,bkd->bqd', pn, v_bd,
                   preferred_element_type=f32)                        # (Bn, 2Sq, D)

    # Single full-D fc projection.
    out = jnp.dot(o.reshape(M, D).astype(ct), wfc_ref[...],
                  preferred_element_type=f32) + bfc_ref[...]          # (M, D) f32
    out_ref[...] = out.reshape(Bn, Sq2, D).astype(out_ref.dtype)


def _pick_batch_block(N, Sq, Sk, D, H, in_itemsize, ct_itemsize,
                      budget_bytes=8 * 1024 * 1024):
    """Largest divisor of N that (a) keeps the per-step VMEM footprint under budget and
    (b) keeps the grid at >= 2 steps (pipelining + v7x megacore sharding).

    The default budget stays under every generation's default scoped-VMEM limit
    (v5e 16 MiB / v6e 32 MiB / v7x 32 MiB), so vmem_limit_bytes need not be raised.
    """
    Sq2, HSk = 2 * Sq, H * Sk
    # Pipelined (double-buffered) per-batch-element blocks: qpoi, qsvi, k, v, mask, output.
    io = (2 * Sq * D + 2 * Sk * D) * in_itemsize + HSk * 4 + Sq2 * D * in_itemsize
    per_b = 2 * io
    # In-kernel temporaries: q/k/v/k_bd/v_bd in compute dtype; scores/probs/l/o/out in f32.
    per_b += (Sq2 * D + 2 * Sk * D + 2 * HSk * D) * ct_itemsize
    per_b += (4 * Sq2 * HSk + 2 * Sq2 * D) * 4
    # Constant (grid-invariant) operands, double-buffered by default: 5 weights + 5 biases
    # + block mask + segment-ones matrix.
    const = 2 * (5 * D * D * ct_itemsize + 5 * D * 4
                 + HSk * D * ct_itemsize + HSk * HSk * ct_itemsize)
    cap_vmem = max(1, (budget_bytes - const) // max(per_b, 1))
    cap_grid = max(1, N // 2)        # keep >= 2 grid steps
    cap = min(cap_vmem, cap_grid)
    bn = 1
    for d in range(1, N + 1):
        if N % d == 0 and d <= cap:
            bn = d
    return bn


def region_mha_pallas(Qpoi, Qsvi, K, V, key_padding_mask, params, num_heads,
                      batch_block=None, mxu_dtype=None):
    """Qpoi/Qsvi: (S_q, N, D); K/V: (S_k, N, D); mask: (N, S_k) bool (True = masked key).

    Returns (poi_out, svi_out), each (S_q, N, D), matching the PyTorch module (eval mode).
    mxu_dtype: dtype used for MXU operands (e.g. jnp.bfloat16 for the TPU fast path);
    defaults to the input dtype so the f32 reference test stays in f32.
    """
    Sq, N, D = Qpoi.shape
    Sk = K.shape[0]
    H = num_heads
    assert D % H == 0
    dk = D // H
    ct = jnp.dtype(mxu_dtype) if mxu_dtype is not None else jnp.dtype(Qpoi.dtype)
    inv_scale = 1.0 / math.sqrt(dk)

    # Batch-major layout for the kernel.  With D=32 the contiguous chunk of a native
    # (S, N, D) strided DMA would be only 128 B, so the wrapper transposes are kept.
    qpoi = jnp.transpose(Qpoi, (1, 0, 2))
    qsvi = jnp.transpose(Qsvi, (1, 0, 2))
    k = jnp.transpose(K, (1, 0, 2))
    v = jnp.transpose(V, (1, 0, 2))

    # Additive key-padding mask (finite large negative, see header), tiled head-major so
    # it lines up with the (H*Sk)-lane score layout.
    mask_add = jnp.where(key_padding_mask, jnp.float32(-1e30), jnp.float32(0.0))  # (N, Sk)
    mask_t = jnp.tile(mask_add[:, None, :], (1, 1, H))                            # (N, 1, H*Sk)

    # Constant block-diagonal helpers (computed once in XLA):
    #   bm[h*Sk + j, h*dk + d] = 1      (masks tiled K/V to one head's columns)
    #   seg[h*Sk + j, h*Sk + j'] = 1    (per-head softmax denominator + broadcast)
    eye_h = jnp.eye(H, dtype=jnp.float32)
    bm = jnp.kron(eye_h, jnp.ones((Sk, dk), jnp.float32)).astype(ct)   # (H*Sk, D)
    seg = jnp.kron(eye_h, jnp.ones((Sk, Sk), jnp.float32)).astype(ct)  # (H*Sk, H*Sk)

    if batch_block is None:
        batch_block = _pick_batch_block(
            N, Sq, Sk, D, H, jnp.dtype(Qpoi.dtype).itemsize, ct.itemsize)
    Bn = batch_block
    assert N % Bn == 0
    grid = (N // Bn,)

    def wt(name, scale=1.0):  # nn.Linear stores (out, in); kernel wants (in, out)
        return (params[name + "_w"].T * scale).astype(ct)

    def bs(name, scale=1.0):
        return (params[name + "_b"] * scale).reshape(1, D).astype(jnp.float32)

    HSk = H * Sk
    x_spec = pl.BlockSpec((Bn, Sq, D), lambda g: (g, 0, 0))
    kv_spec = pl.BlockSpec((Bn, Sk, D), lambda g: (g, 0, 0))
    mask_spec = pl.BlockSpec((Bn, 1, HSk), lambda g: (g, 0, 0))
    bm_spec = pl.BlockSpec((HSk, D), lambda g: (0, 0))
    seg_spec = pl.BlockSpec((HSk, HSk), lambda g: (0, 0))
    w_spec = pl.BlockSpec((D, D), lambda g: (0, 0))
    b_spec = pl.BlockSpec((1, D), lambda g: (0, 0))
    out_spec = pl.BlockSpec((Bn, 2 * Sq, D), lambda g: (g, 0, 0))

    kernel = functools.partial(_region_mha_kernel, num_heads, ct)
    fused = pl.pallas_call(
        kernel,
        out_shape=jax.ShapeDtypeStruct((N, 2 * Sq, D), Qpoi.dtype),
        grid_spec=pltpu.PrefetchScalarGridSpec(
            num_scalar_prefetch=0,
            grid=grid,
            in_specs=[x_spec, x_spec, kv_spec, kv_spec, mask_spec,
                      bm_spec, seg_spec,
                      w_spec, b_spec,   # wq_poi (scale folded in)
                      w_spec, b_spec,   # wq_svi (scale folded in)
                      w_spec, b_spec,   # wk
                      w_spec, b_spec,   # wv
                      w_spec, b_spec],  # fc
            out_specs=out_spec),
        compiler_params=pltpu.CompilerParams(
            dimension_semantics=("parallel",)),   # batch chunks independent -> megacore
    )(qpoi, qsvi, k, v, mask_t, bm, seg,
      wt("wq_poi", inv_scale), bs("wq_poi", inv_scale),
      wt("wq_svi", inv_scale), bs("wq_svi", inv_scale),
      wt("wk"), bs("wk"),
      wt("wv"), bs("wv"),
      wt("fc"), bs("fc"))

    # poi/svi split + layout back to (S, N, D) outside the kernel (free XLA ops).
    poi = jnp.transpose(fused[:, :Sq, :], (1, 0, 2))
    svi = jnp.transpose(fused[:, Sq:, :], (1, 0, 2))
    return poi, svi


def region_mha_reference(Qpoi, Qsvi, K, V, mask, params, H):
    """Pure-JAX mirror of the PyTorch forward (eval mode)."""
    N = Qpoi.shape[1]
    D = Qpoi.shape[2]
    dk = D // H
    scale = jnp.sqrt(jnp.float32(dk))

    def proj(x, w, b):
        y = x @ w.T + b                           # (S, N, D)
        y = jnp.transpose(y, (1, 0, 2))           # (N, S, D)
        y = y.reshape(N, -1, H, dk)
        return jnp.transpose(y, (0, 2, 1, 3))     # (N, H, S, dk)

    qp = proj(Qpoi, params["wq_poi_w"], params["wq_poi_b"])
    qs = proj(Qsvi, params["wq_svi_w"], params["wq_svi_b"])
    k = proj(K, params["wk_w"], params["wk_b"])
    v = proj(V, params["wv_w"], params["wv_b"])

    def attn(q):
        s = jnp.einsum("nhqd,nhkd->nhqk", q, k) / scale
        s = jnp.where(mask[:, None, None, :], -jnp.inf, s)
        p = jax.nn.softmax(s, axis=-1)
        o = jnp.einsum("nhqk,nhkd->nhqd", p, v)
        o = jnp.transpose(o, (0, 2, 1, 3)).reshape(N, -1, D)
        o = o @ params["fc_w"].T + params["fc_b"]
        return jnp.transpose(o, (1, 0, 2))

    return attn(qp), attn(qs)


def init_params(key, d_model):
    """Deterministic nn.Linear-style init: U(-1/sqrt(in), 1/sqrt(in))."""
    bound = 1.0 / math.sqrt(d_model)
    params = {}
    names = ["wq_poi", "wq_svi", "wk", "wv", "fc"]
    keys = jax.random.split(key, 2 * len(names))
    for i, name in enumerate(names):
        params[name + "_w"] = jax.random.uniform(
            keys[2 * i], (d_model, d_model), jnp.float32, -bound, bound)
        params[name + "_b"] = jax.random.uniform(
            keys[2 * i + 1], (d_model,), jnp.float32, -bound, bound)
    return params


if __name__ == "__main__":
    d_model = 32
    num_heads = 4
    S = 8      # sequence length (query and key)
    N = 2      # batch

    root = jax.random.PRNGKey(0)
    kp, kq1, kq2, kk, kv = jax.random.split(root, 5)
    params = init_params(kp, d_model)

    Qpoi = jax.random.normal(kq1, (S, N, d_model), jnp.float32)
    Qsvi = jax.random.normal(kq2, (S, N, d_model), jnp.float32)
    K = jax.random.normal(kk, (S, N, d_model), jnp.float32)
    V = jax.random.normal(kv, (S, N, d_model), jnp.float32)
    # batch 0 masks the last 2 keys, batch 1 masks none (never all-masked)
    key_padding_mask = jnp.arange(S)[None, :] >= jnp.array([S - 2, S])[:, None]

    poi_ref, svi_ref = region_mha_reference(
        Qpoi, Qsvi, K, V, key_padding_mask, params, num_heads)

    # f32 MXU path (default: compute dtype = input dtype).  Tolerances leave headroom
    # for TPU default matmul precision (bf16 passes) differing between the kernel's and
    # the XLA reference's operation groupings.
    poi_out, svi_out = region_mha_pallas(
        Qpoi, Qsvi, K, V, key_padding_mask, params, num_heads)
    jax.block_until_ready((poi_out, svi_out))
    assert poi_out.shape == (S, N, d_model) and svi_out.shape == (S, N, d_model)
    assert jnp.allclose(poi_out, poi_ref, rtol=1e-2, atol=1e-2)
    assert jnp.allclose(svi_out, svi_ref, rtol=1e-2, atol=1e-2)

    # bf16 MXU fast path (review item): same semantics, looser tolerance vs f32 reference.
    poi_bf, svi_bf = region_mha_pallas(
        Qpoi, Qsvi, K, V, key_padding_mask, params, num_heads,
        mxu_dtype=jnp.bfloat16)
    jax.block_until_ready((poi_bf, svi_bf))
    assert jnp.allclose(poi_bf, poi_ref, rtol=5e-2, atol=5e-2)
    assert jnp.allclose(svi_bf, svi_ref, rtol=5e-2, atol=5e-2)

    print("KERNEL_OK")
</pallas_src>

<mosaic_0001>
module attributes {stable_mosaic.version = 11 : i64} {
  func.func @_region_mha_kernel(%arg0: i32, %arg1: memref<1x8x32xf32, #tpu.memory_space<vmem>>, %arg2: memref<1x8x32xf32, #tpu.memory_space<vmem>>, %arg3: memref<1x8x32xf32, #tpu.memory_space<vmem>>, %arg4: memref<1x8x32xf32, #tpu.memory_space<vmem>>, %arg5: memref<1x1x32xf32, #tpu.memory_space<vmem>>, %arg6: memref<32x32xf32, #tpu.memory_space<vmem>>, %arg7: memref<32x32xf32, #tpu.memory_space<vmem>>, %arg8: memref<32x32xf32, #tpu.memory_space<vmem>>, %arg9: memref<1x32xf32, #tpu.memory_space<vmem>>, %arg10: memref<32x32xf32, #tpu.memory_space<vmem>>, %arg11: memref<1x32xf32, #tpu.memory_space<vmem>>, %arg12: memref<32x32xf32, #tpu.memory_space<vmem>>, %arg13: memref<1x32xf32, #tpu.memory_space<vmem>>, %arg14: memref<32x32xf32, #tpu.memory_space<vmem>>, %arg15: memref<1x32xf32, #tpu.memory_space<vmem>>, %arg16: memref<32x32xf32, #tpu.memory_space<vmem>>, %arg17: memref<1x32xf32, #tpu.memory_space<vmem>>, %arg18: memref<1x16x32xf32, #tpu.memory_space<vmem>>) attributes {dimension_semantics = [#tpu.dimension_semantics<parallel>], iteration_bounds = array<i64: 2>, scalar_prefetch = 0 : i64, scratch_operands = 0 : i64, tpu.core_type = #tpu.core_type<tc>, window_params = [{transform_indices = @transform_0, window_bounds = array<i64: 1, 8, 32>}, {transform_indices = @transform_1, window_bounds = array<i64: 1, 8, 32>}, {transform_indices = @transform_2, window_bounds = array<i64: 1, 8, 32>}, {transform_indices = @transform_3, window_bounds = array<i64: 1, 8, 32>}, {transform_indices = @transform_4, window_bounds = array<i64: 1, 1, 32>}, {pipeline_mode = #tpu.pipeline_mode<synchronous>, transform_indices = @transform_5, window_bounds = array<i64: 32, 32>}, {pipeline_mode = #tpu.pipeline_mode<synchronous>, transform_indices = @transform_6, window_bounds = array<i64: 32, 32>}, {pipeline_mode = #tpu.pipeline_mode<synchronous>, transform_indices = @transform_7, window_bounds = array<i64: 32, 32>}, {pipeline_mode = #tpu.pipeline_mode<synchronous>, transform_indices = @transform_8, window_bounds = array<i64: 1, 32>}, {pipeline_mode = #tpu.pipeline_mode<synchronous>, transform_indices = @transform_9, window_bounds = array<i64: 32, 32>}, {pipeline_mode = #tpu.pipeline_mode<synchronous>, transform_indices = @transform_10, window_bounds = array<i64: 1, 32>}, {pipeline_mode = #tpu.pipeline_mode<synchronous>, transform_indices = @transform_11, window_bounds = array<i64: 32, 32>}, {pipeline_mode = #tpu.pipeline_mode<synchronous>, transform_indices = @transform_12, window_bounds = array<i64: 1, 32>}, {pipeline_mode = #tpu.pipeline_mode<synchronous>, transform_indices = @transform_13, window_bounds = array<i64: 32, 32>}, {pipeline_mode = #tpu.pipeline_mode<synchronous>, transform_indices = @transform_14, window_bounds = array<i64: 1, 32>}, {pipeline_mode = #tpu.pipeline_mode<synchronous>, transform_indices = @transform_15, window_bounds = array<i64: 32, 32>}, {pipeline_mode = #tpu.pipeline_mode<synchronous>, transform_indices = @transform_16, window_bounds = array<i64: 1, 32>}, {transform_indices = @transform_17, window_bounds = array<i64: 1, 16, 32>}]} {
    %c0 = arith.constant 0 : index
    %c0_0 = arith.constant 0 : index
    %c0_1 = arith.constant 0 : index
    %0 = vector.load %arg1[%c0, %c0_0, %c0_1] : memref<1x8x32xf32, #tpu.memory_space<vmem>>, vector<1x8x32xf32>
    %1 = vector.shape_cast %0 : vector<1x8x32xf32> to vector<8x32xf32>
    %c0_2 = arith.constant 0 : index
    %c0_3 = arith.constant 0 : index
    %2 = vector.load %arg8[%c0_2, %c0_3] : memref<32x32xf32, #tpu.memory_space<vmem>>, vector<32x32xf32>
    %cst = arith.constant dense<0.000000e+00> : vector<8x32xf32>
    %3 = tpu.matmul %1, %2, %cst {dimension_numbers = #tpu.dot_dimension_numbers<[1], [0], [0], [1], [0, 0, 1, 1], [], []>} : vector<8x32xf32>, vector<32x32xf32>, vector<8x32xf32> -> vector<8x32xf32>
    %c0_4 = arith.constant 0 : index
    %c0_5 = arith.constant 0 : index
    %4 = vector.load %arg9[%c0_4, %c0_5] : memref<1x32xf32, #tpu.memory_space<vmem>>, vector<1x32xf32>
    %5 = vector.broadcast %4 : vector<1x32xf32> to vector<8x32xf32>
    %6 = arith.addf %3, %5 : vector<8x32xf32>
    %7 = vector.shape_cast %6 : vector<8x32xf32> to vector<1x8x32xf32>
    %c0_6 = arith.constant 0 : index
    %c0_7 = arith.constant 0 : index
    %c0_8 = arith.constant 0 : index
    %8 = vector.load %arg2[%c0_6, %c0_7, %c0_8] : memref<1x8x32xf32, #tpu.memory_space<vmem>>, vector<1x8x32xf32>
    %9 = vector.shape_cast %8 : vector<1x8x32xf32> to vector<8x32xf32>
    %c0_9 = arith.constant 0 : index
    %c0_10 = arith.constant 0 : index
    %10 = vector.load %arg10[%c0_9, %c0_10] : memref<32x32xf32, #tpu.memory_space<vmem>>, vector<32x32xf32>
    %cst_11 = arith.constant dense<0.000000e+00> : vector<8x32xf32>
    %11 = tpu.matmul %9, %10, %cst_11 {dimension_numbers = #tpu.dot_dimension_numbers<[1], [0], [0], [1], [0, 0, 1, 1], [], []>} : vector<8x32xf32>, vector<32x32xf32>, vector<8x32xf32> -> vector<8x32xf32>
    %c0_12 = arith.constant 0 : index
    %c0_13 = arith.constant 0 : index
    %12 = vector.load %arg11[%c0_12, %c0_13] : memref<1x32xf32, #tpu.memory_space<vmem>>, vector<1x32xf32>
    %13 = vector.broadcast %12 : vector<1x32xf32> to vector<8x32xf32>
    %14 = arith.addf %11, %13 : vector<8x32xf32>
    %15 = vector.shape_cast %14 : vector<8x32xf32> to vector<1x8x32xf32>
    %c0_14 = arith.constant 0 : index
    %c0_15 = arith.constant 0 : index
    %c0_16 = arith.constant 0 : index
    %16 = vector.load %arg3[%c0_14, %c0_15, %c0_16] : memref<1x8x32xf32, #tpu.memory_space<vmem>>, vector<1x8x32xf32>
    %17 = vector.shape_cast %16 : vector<1x8x32xf32> to vector<8x32xf32>
    %c0_17 = arith.constant 0 : index
    %c0_18 = arith.constant 0 : index
    %18 = vector.load %arg12[%c0_17, %c0_18] : memref<32x32xf32, #tpu.memory_space<vmem>>, vector<32x32xf32>
    %cst_19 = arith.constant dense<0.000000e+00> : vector<8x32xf32>
    %19 = tpu.matmul %17, %18, %cst_19 {dimension_numbers = #tpu.dot_dimension_numbers<[1], [0], [0], [1], [0, 0, 1, 1], [], []>} : vector<8x32xf32>, vector<32x32xf32>, vector<8x32xf32> -> vector<8x32xf32>
    %c0_20 = arith.constant 0 : index
    %c0_21 = arith.constant 0 : index
    %20 = vector.load %arg13[%c0_20, %c0_21] : memref<1x32xf32, #tpu.memory_space<vmem>>, vector<1x32xf32>
    %21 = vector.broadcast %20 : vector<1x32xf32> to vector<8x32xf32>
    %22 = arith.addf %19, %21 : vector<8x32xf32>
    %23 = vector.shape_cast %22 : vector<8x32xf32> to vector<1x8x32xf32>
    %c0_22 = arith.constant 0 : index
    %c0_23 = arith.constant 0 : index
    %c0_24 = arith.constant 0 : index
    %24 = vector.load %arg4[%c0_22, %c0_23, %c0_24] : memref<1x8x32xf32, #tpu.memory_space<vmem>>, vector<1x8x32xf32>
    %25 = vector.shape_cast %24 : vector<1x8x32xf32> to vector<8x32xf32>
    %c0_25 = arith.constant 0 : index
    %c0_26 = arith.constant 0 : index
    %26 = vector.load %arg14[%c0_25, %c0_26] : memref<32x32xf32, #tpu.memory_space<vmem>>, vector<32x32xf32>
    %cst_27 = arith.constant dense<0.000000e+00> : vector<8x32xf32>
    %27 = tpu.matmul %25, %26, %cst_27 {dimension_numbers = #tpu.dot_dimension_numbers<[1], [0], [0], [1], [0, 0, 1, 1], [], []>} : vector<8x32xf32>, vector<32x32xf32>, vector<8x32xf32> -> vector<8x32xf32>
    %c0_28 = arith.constant 0 : index
    %c0_29 = arith.constant 0 : index
    %28 = vector.load %arg15[%c0_28, %c0_29] : memref<1x32xf32, #tpu.memory_space<vmem>>, vector<1x32xf32>
    %29 = vector.broadcast %28 : vector<1x32xf32> to vector<8x32xf32>
    %30 = arith.addf %27, %29 : vector<8x32xf32>
    %31 = vector.shape_cast %30 : vector<8x32xf32> to vector<1x8x32xf32>
    %32 = tpu.concatenate %7, %15 in 1 : vector<1x8x32xf32>, vector<1x8x32xf32> -> vector<1x16x32xf32>
    %c0_30 = arith.constant 0 : index
    %c0_31 = arith.constant 0 : index
    %33 = vector.load %arg6[%c0_30, %c0_31] : memref<32x32xf32, #tpu.memory_space<vmem>>, vector<32x32xf32>
    %34 = tpu.concatenate %23, %23, %23, %23 in 1 : vector<1x8x32xf32>, vector<1x8x32xf32>, vector<1x8x32xf32>, vector<1x8x32xf32> -> vector<1x32x32xf32>
    %35 = vector.shape_cast %33 : vector<32x32xf32> to vector<1x32x32xf32>
    %36 = arith.mulf %34, %35 : vector<1x32x32xf32>
    %37 = tpu.concatenate %31, %31, %31, %31 in 1 : vector<1x8x32xf32>, vector<1x8x32xf32>, vector<1x8x32xf32>, vector<1x8x32xf32> -> vector<1x32x32xf32>
    %38 = vector.shape_cast %33 : vector<32x32xf32> to vector<1x32x32xf32>
    %39 = arith.mulf %37, %38 : vector<1x32x32xf32>
    "tpu.trace_start"() <{level = 10 : i32, message = "bqd,bkd->bqk"}> : () -> ()
    %cst_32 = arith.constant dense<0.000000e+00> : vector<1x16x32xf32>
    %40 = tpu.matmul %32, %36, %cst_32 {dimension_numbers = #tpu.dot_dimension_numbers<[2], [2], [1], [1], [0, 0, 0, 1, 1, 1], [0], [0]>} : vector<1x16x32xf32>, vector<1x32x32xf32>, vector<1x16x32xf32> -> vector<1x16x32xf32>
    "tpu.trace_stop"() : () -> ()
    %c0_33 = arith.constant 0 : index
    %c0_34 = arith.constant 0 : index
    %c0_35 = arith.constant 0 : index
    %41 = vector.load %arg5[%c0_33, %c0_34, %c0_35] : memref<1x1x32xf32, #tpu.memory_space<vmem>>, vector<1x1x32xf32>
    %42 = vector.broadcast %41 : vector<1x1x32xf32> to vector<1x16x32xf32>
    %43 = arith.addf %40, %42 : vector<1x16x32xf32>
    %cst_36 = arith.constant dense<0xFF800000> : vector<1x16xf32>
    %44 = vector.multi_reduction <maximumf>, %43, %cst_36 [2] : vector<1x16x32xf32> to vector<1x16xf32>
    %45 = vector.shape_cast %44 : vector<1x16xf32> to vector<1x16x1xf32>
    %46 = vector.broadcast %45 : vector<1x16x1xf32> to vector<1x16x32xf32>
    %47 = arith.subf %43, %46 : vector<1x16x32xf32>
    %48 = math.exp %47 : vector<1x16x32xf32>
    %49 = vector.shape_cast %48 : vector<1x16x32xf32> to vector<16x32xf32>
    %c0_37 = arith.constant 0 : index
    %c0_38 = arith.constant 0 : index
    %50 = vector.load %arg7[%c0_37, %c0_38] : memref<32x32xf32, #tpu.memory_space<vmem>>, vector<32x32xf32>
    %cst_39 = arith.constant dense<0.000000e+00> : vector<16x32xf32>
    %51 = tpu.matmul %49, %50, %cst_39 {dimension_numbers = #tpu.dot_dimension_numbers<[1], [0], [0], [1], [0, 0, 1, 1], [], []>} : vector<16x32xf32>, vector<32x32xf32>, vector<16x32xf32> -> vector<16x32xf32>
    %cst_40 = arith.constant 1.000000e-30 : f32
    %52 = vector.broadcast %cst_40 : f32 to vector<16x32xf32>
    %53 = arith.maximumf %51, %52 : vector<16x32xf32>
    %54 = tpu.reciprocal %53 : vector<16x32xf32> -> vector<16x32xf32>
    %55 = arith.mulf %49, %54 : vector<16x32xf32>
    %56 = vector.shape_cast %55 : vector<16x32xf32> to vector<1x16x32xf32>
    "tpu.trace_start"() <{level = 10 : i32, message = "bqk,bkd->bqd"}> : () -> ()
    %cst_41 = arith.constant dense<0.000000e+00> : vector<1x16x32xf32>
    %57 = tpu.matmul %56, %39, %cst_41 {dimension_numbers = #tpu.dot_dimension_numbers<[2], [1], [1], [2], [0, 0, 0, 1, 1, 2], [0], [0]>} : vector<1x16x32xf32>, vector<1x32x32xf32>, vector<1x16x32xf32> -> vector<1x16x32xf32>
    "tpu.trace_stop"() : () -> ()
    %58 = vector.shape_cast %57 : vector<1x16x32xf32> to vector<16x32xf32>
    %c0_42 = arith.constant 0 : index
    %c0_43 = arith.constant 0 : index
    %59 = vector.load %arg16[%c0_42, %c0_43] : memref<32x32xf32, #tpu.memory_space<vmem>>, vector<32x32xf32>
    %cst_44 = arith.constant dense<0.000000e+00> : vector<16x32xf32>
    %60 = tpu.matmul %58, %59, %cst_44 {dimension_numbers = #tpu.dot_dimension_numbers<[1], [0], [0], [1], [0, 0, 1, 1], [], []>} : vector<16x32xf32>, vector<32x32xf32>, vector<16x32xf32> -> vector<16x32xf32>
    %c0_45 = arith.constant 0 : index
    %c0_46 = arith.constant 0 : index
    %61 = vector.load %arg17[%c0_45, %c0_46] : memref<1x32xf32, #tpu.memory_space<vmem>>, vector<1x32xf32>
    %62 = vector.broadcast %61 : vector<1x32xf32> to vector<16x32xf32>
    %63 = arith.addf %60, %62 : vector<16x32xf32>
    %64 = vector.shape_cast %63 : vector<16x32xf32> to vector<1x16x32xf32>
    %c0_47 = arith.constant 0 : index
    %c0_48 = arith.constant 0 : index
    %c0_49 = arith.constant 0 : index
    %65 = vector.load %arg18[%c0_47, %c0_48, %c0_49] : memref<1x16x32xf32, #tpu.memory_space<vmem>>, vector<1x16x32xf32>
    tpu.vector_store %arg18[%c0_47, %c0_48, %c0_49], %64 {strides = array<i32>} : memref<1x16x32xf32, #tpu.memory_space<vmem>>, vector<1x16x32xf32>,
    return
  }
  func.func @transform_0(%arg0: i32) -> (i32, i32, i32) {
    %c0_i32 = arith.constant 0 : i32
    %c0_i32_0 = arith.constant 0 : i32
    %c0_i32_1 = arith.constant 0 : i32
    return %arg0, %c0_i32, %c0_i32_0 : i32, i32, i32
  }
  func.func @transform_1(%arg0: i32) -> (i32, i32, i32) {
    %c0_i32 = arith.constant 0 : i32
    %c0_i32_0 = arith.constant 0 : i32
    %c0_i32_1 = arith.constant 0 : i32
    return %arg0, %c0_i32, %c0_i32_0 : i32, i32, i32
  }
  func.func @transform_2(%arg0: i32) -> (i32, i32, i32) {
    %c0_i32 = arith.constant 0 : i32
    %c0_i32_0 = arith.constant 0 : i32
    %c0_i32_1 = arith.constant 0 : i32
    return %arg0, %c0_i32, %c0_i32_0 : i32, i32, i32
  }
  func.func @transform_3(%arg0: i32) -> (i32, i32, i32) {
    %c0_i32 = arith.constant 0 : i32
    %c0_i32_0 = arith.constant 0 : i32
    %c0_i32_1 = arith.constant 0 : i32
    return %arg0, %c0_i32, %c0_i32_0 : i32, i32, i32
  }
  func.func @transform_4(%arg0: i32) -> (i32, i32, i32) {
    %c0_i32 = arith.constant 0 : i32
    %c0_i32_0 = arith.constant 0 : i32
    %c0_i32_1 = arith.constant 0 : i32
    return %arg0, %c0_i32, %c0_i32_0 : i32, i32, i32
  }
  func.func @transform_5(%arg0: i32) -> (i32, i32) {
    %c0_i32 = arith.constant 0 : i32
    %c0_i32_0 = arith.constant 0 : i32
    %c0_i32_1 = arith.constant 0 : i32
    return %c0_i32, %c0_i32_0 : i32, i32
  }
  func.func @transform_6(%arg0: i32) -> (i32, i32) {
    %c0_i32 = arith.constant 0 : i32
    %c0_i32_0 = arith.constant 0 : i32
    %c0_i32_1 = arith.constant 0 : i32
    return %c0_i32, %c0_i32_0 : i32, i32
  }
  func.func @transform_7(%arg0: i32) -> (i32, i32) {
    %c0_i32 = arith.constant 0 : i32
    %c0_i32_0 = arith.constant 0 : i32
    %c0_i32_1 = arith.constant 0 : i32
    return %c0_i32, %c0_i32_0 : i32, i32
  }
  func.func @transform_8(%arg0: i32) -> (i32, i32) {
    %c0_i32 = arith.constant 0 : i32
    %c0_i32_0 = arith.constant 0 : i32
    %c0_i32_1 = arith.constant 0 : i32
    return %c0_i32, %c0_i32_0 : i32, i32
  }
  func.func @transform_9(%arg0: i32) -> (i32, i32) {
    %c0_i32 = arith.constant 0 : i32
    %c0_i32_0 = arith.constant 0 : i32
    %c0_i32_1 = arith.constant 0 : i32
    return %c0_i32, %c0_i32_0 : i32, i32
  }
  func.func @transform_10(%arg0: i32) -> (i32, i32) {
    %c0_i32 = arith.constant 0 : i32
    %c0_i32_0 = arith.constant 0 : i32
    %c0_i32_1 = arith.constant 0 : i32
    return %c0_i32, %c0_i32_0 : i32, i32
  }
  func.func @transform_11(%arg0: i32) -> (i32, i32) {
    %c0_i32 = arith.constant 0 : i32
    %c0_i32_0 = arith.constant 0 : i32
    %c0_i32_1 = arith.constant 0 : i32
    return %c0_i32, %c0_i32_0 : i32, i32
  }
  func.func @transform_12(%arg0: i32) -> (i32, i32) {
    %c0_i32 = arith.constant 0 : i32
    %c0_i32_0 = arith.constant 0 : i32
    %c0_i32_1 = arith.constant 0 : i32
    return %c0_i32, %c0_i32_0 : i32, i32
  }
  func.func @transform_13(%arg0: i32) -> (i32, i32) {
    %c0_i32 = arith.constant 0 : i32
    %c0_i32_0 = arith.constant 0 : i32
    %c0_i32_1 = arith.constant 0 : i32
    return %c0_i32, %c0_i32_0 : i32, i32
  }
  func.func @transform_14(%arg0: i32) -> (i32, i32) {
    %c0_i32 = arith.constant 0 : i32
    %c0_i32_0 = arith.constant 0 : i32
    %c0_i32_1 = arith.constant 0 : i32
    return %c0_i32, %c0_i32_0 : i32, i32
  }
  func.func @transform_15(%arg0: i32) -> (i32, i32) {
    %c0_i32 = arith.constant 0 : i32
    %c0_i32_0 = arith.constant 0 : i32
    %c0_i32_1 = arith.constant 0 : i32
    return %c0_i32, %c0_i32_0 : i32, i32
  }
  func.func @transform_16(%arg0: i32) -> (i32, i32) {
    %c0_i32 = arith.constant 0 : i32
    %c0_i32_0 = arith.constant 0 : i32
    %c0_i32_1 = arith.constant 0 : i32
    return %c0_i32, %c0_i32_0 : i32, i32
  }
  func.func @transform_17(%arg0: i32) -> (i32, i32, i32) {
    %c0_i32 = arith.constant 0 : i32
    %c0_i32_0 = arith.constant 0 : i32
    %c0_i32_1 = arith.constant 0 : i32
    return %arg0, %c0_i32, %c0_i32_0 : i32, i32, i32
  }
}

</mosaic_0001>

<bundles_post_ra>
// kernel: tpu_custom_call.1
= control target key start
LH: loop header
LB: loop body
LE: loop exit
PB: predicated region body
PF: predicated region fallthrough
CT: control target
= control target key end

     0   :  { %s2437_s0 = inlined_call_operand.hbm [shape: f32[2,8,32], index: 0, kind: input, shape index: {}]   ;;  %s2438_s1 = inlined_call_operand.hbm [shape: f32[2,8,32], index: 1, kind: input, shape index: {}]   ;;  %s2439_s2 = inlined_call_operand.hbm [shape: f32[2,8,32], index: 2, kind: input, shape index: {}]   ;;  %s2440_s3 = inlined_call_operand.hbm [shape: f32[2,8,32], index: 3, kind: input, shape index: {}]   ;;  %s2441_s4 = inlined_call_operand.vmem [shape: f32[2,1,32], index: 4, kind: input, shape index: {}]   ;;  %s2442_s5 = inlined_call_operand.hbm [shape: f32[32,32], index: 5, kind: input, shape index: {}]   ;;  %s2443_s6 = inlined_call_operand.hbm [shape: f32[32,32], index: 6, kind: input, shape index: {}]   ;;  %s2444_s7 = inlined_call_operand.hbm [shape: f32[32,32], index: 7, kind: input, shape index: {}]   ;;  %s2445_s8 = inlined_call_operand.vmem [shape: f32[1,32], index: 8, kind: input, shape index: {}]   ;;  %s2446_s9 = inlined_call_operand.hbm [shape: f32[32,32], index: 9, kind: input, shape index: {}]   ;;  %s2447_s10 = inlined_call_operand.vmem [shape: f32[1,32], index: 10, kind: input, shape index: {}]   ;;  %s2448_s11 = inlined_call_operand.hbm [shape: f32[32,32], index: 11, kind: input, shape index: {}]   ;;  %s2449_s12 = inlined_call_operand.vmem [shape: f32[1,32], index: 12, kind: input, shape index: {}]   ;;  %s2450_s13 = inlined_call_operand.hbm [shape: f32[32,32], index: 13, kind: input, shape index: {}]   ;;  %s2451_s14 = inlined_call_operand.vmem [shape: f32[1,32], index: 14, kind: input, shape index: {}]   ;;  %s2452_s15 = inlined_call_operand.hbm [shape: f32[32,32], index: 15, kind: input, shape index: {}]   ;;  %s2453_s16 = inlined_call_operand.vmem [shape: f32[1,32], index: 16, kind: input, shape index: {}]   ;;  %s2454_s17 = inlined_call_operand.hbm [shape: f32[2,16,32], index: 17, kind: output, shape index: {}]  }
   0x1   :  { %2472 = sst [smem:[#allocation34_spill]] %s2437_s0 }
   0x2   :  { %2473 = sst [smem:[#allocation35_spill]] %s2438_s1 }
   0x3   :  { %2474 = sst [smem:[#allocation36_spill]] %s2442_s5 }
   0x4   :  { %2475 = sst [smem:[#allocation37_spill]] %s2443_s6 }
   0x5   :  { %2476 = sst [smem:[#allocation38_spill]] %s2444_s7 }
   0x6   :  { %2477 = sst [smem:[#allocation39_spill]] %s2445_s8 }
   0x7   :  { %2478 = sst [smem:[#allocation40_spill]] %s2446_s9 }
   0x8   :  { %2479 = sst [smem:[#allocation41_spill]] %s2447_s10 }
   0x9   :  { %2480 = sst [smem:[#allocation42_spill]] %s2448_s11 }
   0xa   :  { %2481 = sst [smem:[#allocation43_spill]] %s2450_s13 }
   0xb   :  { %2482 = sst [smem:[#allocation44_spill]] %s2451_s14 }
   0xc   :  { %2483 = sst [smem:[#allocation45_spill]] %s2453_s16 }
   0xd   :  { %2484 = sst [smem:[#allocation46_spill]] %s2454_s17 }
   0xe   :  { %22 = vsyncpa [#allocation3], 0 }
   0xf   :  { %24 = vsyncpa [#allocation3 + $0x1], 0 }
  0x10   :  { %25 = vsyncpa [#allocation6], 0 }
  0x11   :  { %27 = vsyncpa [#allocation6 + $0x1], 0 }
  0x12   :  { %28 = vsyncpa [#allocation9], 0 }
  0x13   :  { %30 = vsyncpa [#allocation9 + $0x1], 0 }
  0x14   :  { %31 = vsyncpa [#allocation12], 0 }
  0x15   :  { %32 = vsyncpa [#allocation15], 0 }
  0x16   :  { %33 = vsyncpa [#allocation18], 0 }
  0x17   :  { %34 = vsyncpa [#allocation4], 0 }
  0x18   :  { %36 = vsyncpa [#allocation4 + $0x1], 0  ;;  %s2096_s24 = smov 0   ;;  %s2098_s25 = smov 0  }
  0x19   :  { %s2100_s26 = smov 0   ;;  %s2102_s27 = smov 0  }
  0x1a LB: > { %2485 = sst [smem:[#allocation29_spill]] %s1981_s24  ;;  %s2120_s30 = sadd.s32 4294967295, %s1993_s27   ;;  %s1993_s27 = sphi %s2102_s27, %s2525_s27   ;;  %s1989_s26 = sphi %s2100_s26, %s2529_s26   ;;  %s1985_s25 = sphi %s2098_s25, %s2528_s25   ;;  %s1981_s24 = sphi %s2096_s24, %s2527_s24  }
  0x1b   : > { %s2486_s5 = sld [smem:[#allocation36_spill]]  ;;  %p1371_p0 = scmp.ge.s32.totalorder %s1993_s27, 1 }
  0x1c   : > { %p2469_p1 = scmp.eq.s32.totalorder %s2120_s30, 0  ;;  %p455_p2 = scmp.lt.s32.totalorder %s1993_s27, 3 }
  0x1d   : > { %s1995_s19 = smov [#allocation10]   ;;  %s2488_s6 = sld [smem:[#allocation37_spill]] }
  0x1e   : > { %p2125_p3 = pnand %p1371_p0, %p455_p2  ;;  %s468_s1 = sshll.u32 %s1995_s19, 4  ;;  %s469_s1 = int_to_ptr.vmem [resolvable:$true] %s468_s1 }
  0x1f   : > { %s2490_s9 = sld [smem:[#allocation40_spill]]  ;;  %s2458_s16 = smov 128  }
  0x20   : > { %p1461_p4 = pneg %p2125_p3  ;;  %s2460_s20 = smov 8  }
  0x21   : > { %s466_s0 = sshll.u32 %s2486_s5, 4  ;;  %s1996_s5 = smov [#allocation11]   ;;  %s467_s0 = int_to_ptr.hbm [resolvable:$true] %s466_s0 }
  0x22   : > { %p2137_p6 = pnand %p1461_p4, %p2469_p1  ;;  %s482_s17 = sshll.u32 %s1996_s5, 4  ;;  %s483_s17 = int_to_ptr.vmem [resolvable:$true] %s482_s17 }
  0x23   : > { %s480_s22 = sshll.u32 %s2488_s6, 4  ;;  %s2491_s13 = sld [smem:[#allocation43_spill]]  ;;  %s481_s22 = int_to_ptr.hbm [resolvable:$true] %s480_s22 }
  0x24   : > { %1464 = dma.hbm_to_vmem [thread:$0]  (!%p2137_p6), %s467_s0, 512, %s469_s1, [#allocation9], %s2458_s16, %s2458_s16, %s2460_s20  }
  0x25   : > { %s511_s19 = sshll.u32 %s2490_s9, 4  ;;  %s1999_s29 = smov [#allocation14]   ;;  %s512_s19 = int_to_ptr.hbm [resolvable:$true] %s511_s19 }
  0x26   : > { %1467 = dma.hbm_to_vmem [thread:$0]  (!%p2137_p6), %s481_s22, 512, %s483_s17, [#allocation12], %s2458_s16, %s2458_s16, %s2460_s20  }
  0x27   : > { %s513_s0 = sshll.u32 %s1999_s29, 4  ;;  %s2000_s17 = smov [#allocation17]   ;;  %s514_s0 = int_to_ptr.vmem [resolvable:$true] %s513_s0 }
  0x28   : > { %1473 = dma.hbm_to_vmem [thread:$0]  (!%p2137_p6), %s512_s19, 512, %s514_s0, [#allocation15], %s2458_s16, %s2458_s16, %s2460_s20  }
  0x29   : > { %s545_s28 = sshll.u32 %s2491_s13, 4  ;;  %s547_s1 = sshll.u32 %s2000_s17, 4  ;;  %s546_s28 = int_to_ptr.hbm [resolvable:$true] %s545_s28  ;;  %s548_s1 = int_to_ptr.vmem [resolvable:$true] %s547_s1 }
  0x2a   : > { %1479 = dma.hbm_to_vmem [thread:$0]  (!%p2137_p6), %s546_s28, 512, %s548_s1, [#allocation18], %s2458_s16, %s2458_s16, %s2460_s20  }
  0x2b   : > { %s1370_s22 = sadd.s32 4294967294, %s1993_s27   ;;  %s2169_s5 = sadd.s32 1, %s1993_s27  }
  0x2c   : > { %2492 = sst [smem:[#allocation30_spill]] %s2169_s5  ;;  %s46_s21 = ssub.s32 %s1993_s27, %s2169_s5 }
  0x2d   : > { %s49_s29 = sadd.s32 1, %s1989_s26  ;;  %p47_p7 = scmp.eq.s32.totalorder %s46_s21, 0 }
  0x2e   : > { %p56_p8 = scmp.ne.s32.totalorder %s1989_s26, %s1985_s25  ;;  %p57_p9 = scmp.eq.s32.totalorder %s1993_s27, 0 }
  0x2f   : > { %p62_p10 = scmp.ne.s32.totalorder %s1985_s25, %s1981_s24  ;;  %p442_p13 = scmp.eq.s32.totalorder %s2120_s30, 1 }
  0x30   : > { %s2180_s19 = scalar_select %p47_p7, %s1989_s26, %s49_s29  }
  0x31   : > { %p58_p11 = por %p57_p9, %p56_p8  ;;  %p2184_p12 = por %p2469_p1, %p62_p10 }
  0x32   : > { %2493 = sst [smem:[#allocation31_spill]] %s2180_s19  ;;  %p448_p0 = scmp.eq.s32.totalorder %s1370_s22, 1 }
  0x33   : > { %p1507_p2 = scmp.lt.s32.totalorder %s1993_s27, 2  ;;  %s2465_s28 = sand.u32 1, %s1989_s26  }
  0x34   : > { %p2191_p4 = por %p442_p13, %p56_p8  ;;  %p2195_p5 = por %p448_p0, %p62_p10 }
  0x35   : > { %s2201_s21 = sshll.u32 %s2465_s28, 3  ;;  %s2204_s29 = sshll.u32 %s1993_s27, 3 }
  0x36   : > { %s2495_s17 = scalar_select %p2191_p4, 1, 0 }
  0x37   : > { %s2497_s1 = scalar_select %p2195_p5, 1, 0 }
  0x38   : > { %2496 = sst [smem:[#allocation32_spill]] %s2495_s17  ;;  %p2206_p7 = pnand %p1507_p2, %p58_p11 }
  0x39   : > { %2498 = sst [smem:[#allocation33_spill]] %s2497_s1  ;;  %s2470_s22 = sand.u32 1, %s1993_s27  }
  0x3a   : > { %s2500_s9 = sld [smem:[#allocation35_spill]]  ;;  %s604_s5 = scalar_lea.vmem [#allocation5], %s2201_s21 }
  0x3b   : > { %s612_s1 = sshll.u32 %s604_s5, 4  ;;  %s2218_s28 = scalar_lea.sflag [#allocation6], %s2470_s22  ;;  %s613_s1 = int_to_ptr.vmem [resolvable:$true] %s612_s1 }
  0x3c   : > { %p1697_p9 = pneg %p2206_p7 }
  0x40   : > { %s608_s13 = scalar_lea.hbm %s2500_s9, %s2204_s29 }
  0x41   : > { %s610_s19 = sshll.u32 %s608_s13, 4  ;;  %s1700_s13 = scalar_lea.hbm %s2500_s9, 16  ;;  %s611_s19 = int_to_ptr.hbm [resolvable:$true] %s610_s19 }
  0x42   : > { %s1693_s24 = sshra.s32 %s611_s19, 4  ;;  %s1694_s24 = int_to_ptr.hbm [resolvable:$true] %s1693_s24 }
  0x43   : > { %s1695_s17 = scalar_lea.hbm %s1694_s24, 8  ;;  %p1701_p13 = scmp.lt.s32.totalorder %s1694_s24, %s2500_s9 }
  0x44   : > { %p1696_p8 = scmp.ne.s32.totalorder %s1694_s24, %s1695_s17  ;;  %p1702_p0 = scmp.lt.s32.totalorder %s1700_s13, %s1695_s17 }
  0x46   : > { %p1698_p10 = pnand %p1697_p9, %p1696_p8  ;;  %p1703_p2 = por %p1702_p0, %p1701_p13 }
  0x48   : > { %p1699_p11 = pneg %p1698_p10 }
  0x4a   : > { %p1704_p1 = pnand %p1703_p2, %p1699_p11 }
  0x4c   : > { %1707 = shalt.err (!%p1704_p1)
}
  0x4d   : > { %1489 = dma.hbm_to_vmem [thread:$0]  (!%p2206_p7), %s611_s19, 128, %s613_s1, %s2218_s28  }
  0x4e   : > { %s2501_s7 = sld [smem:[#allocation38_spill]]  ;;  %s2001_s6 = smov [#allocation13]  }
  0x4f   : > { %s496_s14 = sshll.u32 %s2001_s6, 4  ;;  %s2502_s11 = sld [smem:[#allocation42_spill]]  ;;  %s497_s14 = int_to_ptr.vmem [resolvable:$true] %s496_s14 }
  0x50   : > { %s2503_s13 = smov 8   ;;  %s2504_s5 = smov 128  }
  0x51   : > { %s562_s1 = sshll.u32 %s2452_s15, 4  ;;  %s2002_s22 = smov [#allocation16]   ;;  %s563_s1 = int_to_ptr.hbm [resolvable:$true] %s562_s1 }
  0x52   : > { %s2003_s6 = smov [#allocation19]   ;;  %s2505_s17 = sld [smem:[#allocation34_spill]] }
  0x53   : > { %s564_s24 = sshll.u32 %s2003_s6, 4  ;;  %s585_s10 = scalar_lea.vmem [#allocation2], %s2201_s21  ;;  %s565_s24 = int_to_ptr.vmem [resolvable:$true] %s564_s24 }
  0x54   : > { %s494_s8 = sshll.u32 %s2501_s7, 4  ;;  %s530_s7 = sshll.u32 %s2002_s22, 4  ;;  %s495_s8 = int_to_ptr.hbm [resolvable:$true] %s494_s8  ;;  %s531_s7 = int_to_ptr.vmem [resolvable:$true] %s530_s7 }
  0x55   : > { %s528_s20 = sshll.u32 %s2502_s11, 4  ;;  %s593_s22 = sshll.u32 %s585_s10, 4  ;;  %s529_s20 = int_to_ptr.hbm [resolvable:$true] %s528_s20  ;;  %s594_s22 = int_to_ptr.vmem [resolvable:$true] %s593_s22 }
  0x56   : > { %1470 = dma.hbm_to_vmem [thread:$0]  (!%p2137_p6), %s495_s8, 512, %s497_s14, [#allocation12], %s2504_s5, %s2504_s5, %s2503_s13  }
  0x57   : > { %1476 = dma.hbm_to_vmem [thread:$0]  (!%p2137_p6), %s529_s20, 512, %s531_s7, [#allocation15], %s2504_s5, %s2504_s5, %s2503_s13  }
  0x58   : > { %1482 = dma.hbm_to_vmem [thread:$0]  (!%p2137_p6), %s563_s1, 512, %s565_s24, [#allocation18], %s2504_s5, %s2504_s5, %s2503_s13  }
  0x59   : > { %s589_s19 = scalar_lea.hbm %s2505_s17, %s2204_s29  ;;  %s2506_s11 = sand.u32 1, %s1989_s26  }
  0x5a   : > { %s591_s9 = sshll.u32 %s589_s19, 4  ;;  %s582_s7 = scalar_lea.sflag [#allocation3], %s2506_s11  ;;  %s592_s9 = int_to_ptr.hbm [resolvable:$true] %s591_s9 }
  0x5b   : > { %s1813_s20 = sshra.s32 %s592_s9, 4  ;;  %s1820_s5 = scalar_lea.hbm %s2505_s17, 16  ;;  %s1814_s20 = int_to_ptr.hbm [resolvable:$true] %s1813_s20 }
  0x5c   : > { %s1815_s6 = scalar_lea.hbm %s1814_s20, 8  ;;  %p1821_p6 = scmp.lt.s32.totalorder %s1814_s20, %s2505_s17 }
  0x5d   : > { %p1816_p1 = scmp.ne.s32.totalorder %s1814_s20, %s1815_s6  ;;  %p1822_p11 = scmp.lt.s32.totalorder %s1820_s5, %s1815_s6 }
  0x5f   : > { %p1818_p8 = pnand %p1816_p1, %p1697_p9  ;;  %p1823_p13 = por %p1822_p11, %p1821_p6 }
  0x61   : > { %p1819_p10 = pneg %p1818_p8 }
  0x63   : > { %p1824_p0 = pnand %p1823_p13, %p1819_p10 }
  0x65   : > { %1827 = shalt.err (!%p1824_p0)
}
  0x66   : > { %1486 = dma.hbm_to_vmem [thread:$0]  (!%p2206_p7), %s592_s9, 128, %s594_s22, %s582_s7  }
  0x67   : > { %s627_s14 = scalar_lea.hbm %s2439_s2, %s2204_s29  ;;  %s623_s19 = scalar_lea.vmem [#allocation7], %s2201_s21 }
  0x68   : > { %s631_s10 = sshll.u32 %s623_s19, 4  ;;  %s629_s23 = sshll.u32 %s627_s14, 4  ;;  %s632_s10 = int_to_ptr.vmem [resolvable:$true] %s631_s10  ;;  %s630_s23 = int_to_ptr.hbm [resolvable:$true] %s629_s23 }
  0x69   : > { %s1843_s20 = sshra.s32 %s630_s23, 4  ;;  %s1850_s9 = scalar_lea.hbm %s2439_s2, 16  ;;  %s1844_s20 = int_to_ptr.hbm [resolvable:$true] %s1843_s20 }
  0x6a   : > { %s1845_s6 = scalar_lea.hbm %s1844_s20, 8  ;;  %p1851_p10 = scmp.lt.s32.totalorder %s1844_s20, %s2439_s2 }
  0x6b   : > { %p1846_p2 = scmp.ne.s32.totalorder %s1844_s20, %s1845_s6  ;;  %p1852_p6 = scmp.lt.s32.totalorder %s1850_s9, %s1845_s6 }
  0x6d   : > { %p1848_p1 = pnand %p1846_p2, %p1697_p9  ;;  %p1853_p11 = por %p1852_p6, %p1851_p10 }
  0x6f   : > { %p1849_p8 = pneg %p1848_p1 }
  0x71   : > { %p1854_p13 = pnand %p1853_p11, %p1849_p8 }
  0x73   : > { %1857 = shalt.err (!%p1854_p13)
}
  0x74   : > { %1492 = dma.hbm_to_vmem [thread:$0]  (!%p2206_p7), %s630_s23, 128, %s632_s10, %s2218_s28  }
  0x75   : > { %s646_s11 = scalar_lea.hbm %s2440_s3, %s2204_s29  ;;  %s642_s8 = scalar_lea.vmem [#allocation8], %s2201_s21 }
  0x76   : > { %s650_s14 = sshll.u32 %s642_s8, 4  ;;  %s648_s19 = sshll.u32 %s646_s11, 4  ;;  %s651_s14 = int_to_ptr.vmem [resolvable:$true] %s650_s14  ;;  %s649_s19 = int_to_ptr.hbm [resolvable:$true] %s648_s19 }
  0x77   : > { %s2507_s20 = sand.u32 1, %s1993_s27   ;;  %s1873_s13 = sshra.s32 %s649_s19, 4  ;;  %s1874_s13 = int_to_ptr.hbm [resolvable:$true] %s1873_s13 }
  0x78   : > { %s639_s6 = scalar_lea.sflag [#allocation9], %s2507_s20  ;;  %s1875_s5 = scalar_lea.hbm %s1874_s13, 8 }
  0x79   : > { %p1876_p0 = scmp.ne.s32.totalorder %s1874_s13, %s1875_s5  ;;  %s1880_s23 = scalar_lea.hbm %s2440_s3, 16 }
  0x7a   : > { %p1881_p8 = scmp.lt.s32.totalorder %s1874_s13, %s2440_s3  ;;  %p1882_p10 = scmp.lt.s32.totalorder %s1880_s23, %s1875_s5 }
  0x7b   : > { %p1878_p2 = pnand %p1876_p0, %p1697_p9 }
  0x7c   : > { %p1883_p6 = por %p1882_p10, %p1881_p8 }
  0x7d   : > { %p1879_p1 = pneg %p1878_p2 }
  0x7f   : > { %p1884_p11 = pnand %p1883_p6, %p1879_p1 }
  0x81   : > { %1887 = shalt.err (!%p1884_p11)
}
  0x82   : > { %1495 = dma.hbm_to_vmem [thread:$0]  (!%p2206_p7), %s649_s19, 128, %s651_s14, %s639_s6  }
  0x83   : > { %665 = sbr.rel (%p2125_p3) target bundleno = 995 (0x3e3), region = 88  ;;  %s2314_s9 = sand.u32 (!%p2125_p3), 1, %s1985_s25  }
  0x84   : > { %s2317_s22 = sshll.u32 (!%p2125_p3), %s2314_s9, 3  ;;  %s668_s7 = scalar_lea.sflag (!%p2125_p3), [#allocation3], %s2314_s9 }
  0x85   : > { %s671_s1 = scalar_lea.vmem (!%p2125_p3), [#allocation2], %s2317_s22 }
  0x88   : > { %1948 = dma.done.wait (%p2184_p12), %s668_s7, 128  }
  0x89   : > { %1950 = vsyncadd (%p2184_p12), %s668_s7, 4294967168  ;;  %s677_s16 = sand.u32 1, %s2120_s30   ;;  %s681_s24 = scalar_lea.vmem [#allocation5], %s2317_s22 }
  0x8a   : > { %s678_s18 = scalar_lea.sflag [#allocation6], %s677_s16 }
  0x8b   : > { %1952 = dma.done.wait (%p2184_p12), %s678_s18, 256  }
  0x8c   : > { %1954 = vsyncadd (%p2184_p12), %s678_s18, 4294967040  ;;  %s691_s11 = scalar_lea.vmem [#allocation7], %s2317_s22  ;;  %s698_s8 = scalar_lea.sflag [#allocation9], %s677_s16 }
  0x8d   : > { %s701_s14 = scalar_lea.vmem [#allocation8], %s2317_s22 }
  0x8e   : > { %1956 = dma.done.wait (%p2184_p12), %s698_s8, 128  }
  0x8f   : > { %1958 = vsyncadd (%p2184_p12), %s698_s8, 4294967168  ;;  %p2508_p3 = scmp.eq.s32.totalorder %s2120_s30, 0 }
  0x91   : > { %1960 = dma.done.wait (%p2508_p3), [#allocation9], 512   ;;  %p2509_p7 = pmov %p2508_p3 }
  0x92   : > { %p2510_p9 = pmov %p2508_p3 }
  0x93   : > { %1962 = vsyncadd (%p2509_p7), [#allocation9], 4294966784 }
  0x94   : > { %1964 = dma.done.wait (%p2510_p9), [#allocation12], 1024   ;;  %p2511_p13 = pmov %p2508_p3 }
  0x95   : > { %p2512_p0 = pmov %p2508_p3 }
  0x96   : > { %1966 = vsyncadd (%p2511_p13), [#allocation12], 4294966272 }
  0x97   : > { %1968 = dma.done.wait (%p2512_p0), [#allocation15], 1024   ;;  %p2513_p2 = pmov %p2512_p0 }
  0x98   : > { %p2514_p12 = pmov %p2512_p0 }
  0x99   : > { %1970 = vsyncadd (%p2513_p2), [#allocation15], 4294966272 }
  0x9a   : > { %1972 = dma.done.wait (%p2514_p12), [#allocation18], 1024   ;;  %p2515_p1 = pmov %p2512_p0 }
  0x9b   : > { %v878_v0 = vld [vmem:[#allocation16 + $0x18] sm:$0xff]  ;;  %v877_v1 = vld [vmem:[#allocation16 + $0x10] sm:$0xff]  ;;  %v876_v3 = vld [vmem:[#allocation16 + $0x8] sm:$0xff]  ;;  %vm818_vm0 = vcmask 261120   ;;  %p806_p8 = scmp.lt.s32.totalorder %s2120_s30, 1  ;;  %s2516_s23 = sld [smem:[#allocation39_spill]] }
  0x9c   : > { %1974 = vsyncadd (%p2515_p1), [#allocation18], 4294966272  ;;  %898 = vmatpush.msra.mxu2 %v878_v0  ;;  %v813_v2 = vld [vmem:[#allocation13 + $0x18] sm:$0xff]  ;;  %v875_v4 = vld [vmem:[#allocation16] sm:$0xff]  ;;  %s2517_s7 = sld [smem:[#allocation41_spill]]  ;;  %s1400_s18 = sshll.u32 %s2314_s9, 4 }
  0x9d   : > { %834 = vmatpush.msra.mxu0 %v813_v2  ;;  %v812_v5 = vld [vmem:[#allocation13 + $0x10] sm:$0xff]  ;;  %v811_v6 = vld [vmem:[#allocation13 + $0x8] sm:$0xff]  ;;  %v846_v7 = vld [vmem:[#allocation14 + $0x18] sm:$0xff]  ;;  %s807_s0 = scalar_select %p806_p8, %s2120_s30, 1 }
  0x9e   : > { %899 = vmatpush.msra.mxu2 %v877_v1  ;;  %v845_v8 = vld [vmem:[#allocation14 + $0x10] sm:$0xff]  ;;  %v874_v9 = vld [vmem:[%s691_s11] sm:$0xff]  ;;  %866 = vmatpush.msra.mxu1 %v846_v7  ;;  %v2368_v17 = vld [vmem:[#allocation10 + $0x18] sm:$0xff]  ;;  %s2518_s16 = sld [smem:[#allocation44_spill]]  ;;  %s805_s5 = scalar_lea.vmem [#allocation20], %s1400_s18 }
  0x9f   : > { %835 = vmatpush.msra.mxu0 %v812_v5  ;;  %v810_v10 = vld [vmem:[#allocation13] sm:$0xff]  ;;  %v844_v12 = vld [vmem:[#allocation14 + $0x8] sm:$0xff]  ;;  %v842_v14 = vld [vmem:[%s681_s24] sm:$0xff]  ;;  %s808_s6 = scalar_lea.vmem %s2441_s4, %s807_s0  ;;  %s2519_s8 = sld [smem:[#allocation45_spill]] }
  0xa0   : > { %v809_v11 = vld [vmem:[%s671_s1] sm:$0xff]  ;;  %900 = vmatpush.msra.mxu2 %v876_v3  ;;  %867 = vmatpush.msra.mxu1 %v845_v8  ;;  %v940_v20 = vld [vmem:[#allocation10 + $0x10] sm:$0xff]  ;;  %v910_v39 = vld [vmem:[#allocation17 + $0x18] sm:$0xff]  ;;  %s2520_s20 = sld [smem:[#allocation46_spill]]  ;;  %s1153_s28 = sshll.u32 %s805_s5, 4  ;;  %s1154_s28 = int_to_ptr.vmem [resolvable:$true] %s1153_s28 }
  0xa1   : > { %836 = vmatpush.msra.mxu0 %v811_v6  ;;  %v843_v13 = vld [vmem:[#allocation14] sm:$0xff]  ;;  %v939_v22 = vld [vmem:[#allocation10 + $0x8] sm:$0xff]  ;;  %930 = vmatpush.msra.mxu3 %v910_v39  ;;  %v909_v40 = vld [vmem:[#allocation17 + $0x10] sm:$0xff] }
  0xa2   : > { %901 = vmatpush.msra.mxu2 %v875_v4  ;;  %868 = vmatpush.msra.mxu1 %v844_v12  ;;  %v1559_v15 = vld [vmem:[%s2449_s12] ss:$0 sm:$0xff]  ;;  %v1010_v41 = vld [vmem:[#allocation11 + $0x18] sm:$0xff]  ;;  %v908_v42 = vld [vmem:[#allocation17 + $0x8] sm:$0xff] }
  0xa3   : > { %1403 = vmatmul.msk.f32.vlgmr.msra.gmra.mxu2 %vm818_vm0, %v874_v9  ;;  %837 = vmatpush.msra.mxu0 %v810_v10  ;;  %v1560_v24 = vld [vmem:[%s2516_s23] ss:$0 sm:$0xff]  ;;  %v1009_v43 = vld [vmem:[#allocation11 + $0x10] sm:$0xff]  ;;  %v1008_v45 = vld [vmem:[#allocation11 + $0x8] sm:$0xff]  ;;  %s1141_s23 = scalar_lea.sflag [#allocation4], %s2314_s9 }
  0xa4   : > { %1401 = vmatmul.msk.f32.vlgmr.msra.gmra.mxu0 %vm818_vm0, %v809_v11  ;;  %869 = vmatpush.msra.mxu1 %v843_v13  ;;  %v938_v25 = vld [vmem:[#allocation10] sm:$0xff]  ;;  %v906_v46 = vld [vmem:[%s701_s14] sm:$0xff]  ;;  %v1102_v2 = vld [vmem:[#allocation19 + $0x8] sm:$0xff]  ;;  %s1422_s14 = sshll.u32 %s2120_s30, 4 }
  0xa5   : > { %1402 = vmatmul.msk.f32.vlgmr.msra.gmra.mxu1 %vm818_vm0, %v842_v14  ;;  %v1561_v29 = vld [vmem:[%s2517_s7] ss:$0 sm:$0xff]  ;;  %931 = vmatpush.msra.mxu3 %v909_v40  ;;  %v1104_v63 = vld [vmem:[#allocation19 + $0x18] sm:$0xff]  ;;  %v1103_v0 = vld [vmem:[#allocation19 + $0x10] sm:$0xff] }
  0xa6   : > { %v1562_v32 = vld [vmem:[%s808_s6] ss:$0 sm:$0xff]  ;;  %1029 = vmatpush.msrb.mxu1 %v1010_v41  ;;  %s1152_s13 = scalar_lea.hbm %s2520_s20, %s1422_s14  ;;  %s1923_s22 = scalar_lea.hbm %s2520_s20, 32 }
  0xa7   : > { %v907_v44 = vld [vmem:[#allocation17] sm:$0xff]  ;;  %932 = vmatpush.msra.mxu3 %v908_v42  ;;  %s1155_s10 = sshll.u32 %s1152_s13, 4  ;;  %s1156_s10 = int_to_ptr.hbm [resolvable:$true] %s1155_s10 }
  0xa8   : > { %1030 = vmatpush.msrb.mxu1 %v1009_v43  ;;  %v1007_v47 = vld [vmem:[#allocation11] sm:$0xff]  ;;  %s1917_s30 = sshra.s32 %s1156_s10, 4  ;;  %s1918_s30 = int_to_ptr.hbm [resolvable:$true] %s1917_s30 }
  0xa9   : > { %933 = vmatpush.msra.mxu3 %v907_v44  ;;  %v1563_v56 = vld [vmem:[%s2518_s16] ss:$0 sm:$0xff]  ;;  %s1919_s29 = scalar_lea.hbm %s1918_s30, 16  ;;  %p1924_p3 = scmp.lt.s32.totalorder %s1918_s30, %s2520_s20 }
  0xaa   : > { %1031 = vmatpush.msrb.mxu1 %v1008_v45  ;;  %1404 = vmatmul.msk.f32.vlgmr.msra.gmra.mxu3 %vm818_vm0, %v906_v46  ;;  %v1101_v4 = vld [vmem:[#allocation19] sm:$0xff]  ;;  %p1920_p10 = scmp.ne.s32.totalorder %s1918_s30, %s1919_s29  ;;  %p1925_p7 = scmp.lt.s32.totalorder %s1923_s22, %s1919_s29 }
  0xab   : > { %1127 = vmatpush.msrb.mxu3 %v1104_v63 }
  0xac   : > { %1032 = vmatpush.msrb.mxu1 %v1007_v47  ;;  %p1921_p6 = pnand %p1920_p10, %p2191_p4  ;;  %p1926_p9 = por %p1925_p7, %p1924_p3 }
  0xad   : > { %1128 = vmatpush.msrb.mxu3 %v1103_v0 }
  0xae   : > { %p1922_p11 = pneg %p1921_p6 }
  0xaf   : > { %1129 = vmatpush.msrb.mxu3 %v1102_v2 }
  0xb0   : > { %p1927_p13 = pnand %p1926_p9, %p1922_p11 }
  0xb1   : > { %1130 = vmatpush.msrb.mxu3 %v1101_v4 }
 0x121   : > { %v839_v26 = vpop.f32.mrf.mxu0 }
 0x122   : > { %v840_v28 = vadd.f32 %v1560_v24, %v839_v26  ;;  %v871_v30 = vpop.f32.mrf.mxu1 }
 0x123   : > { %v872_v31 = vadd.f32 %v1561_v29, %v871_v30 }
 0x126   : > { %v903_v16 = vpop.f32.mrf.mxu2 }
 0x127   : > { %v904_v18 = vadd.f32 %v1559_v15, %v903_v16 }
 0x129   : > { %v945_v19 = vmul.f32 %v2368_v17, %v904_v18  ;;  %v944_v21 = vmul.f32 %v940_v20, %v904_v18  ;;  %v943_v23 = vmul.f32 %v939_v22, %v904_v18  ;;  %v942_v27 = vmul.f32 %v938_v25, %v904_v18 }
 0x12b   : > { %1405 = vmatpush.xpose.msk.msrb.mxu0 %vm818_vm0, %v945_v19 }
 0x12d   : > { %v935_v57 = vpop.f32.mrf.mxu3 }
 0x12e   : > { %v936_v58 = vadd.f32 %v1563_v56, %v935_v57 }
 0x12f   : > { %1406 = vmatpush.xpose.msk.msrb.mxu0 %vm818_vm0, %v944_v21 }
 0x130   : > { %v949_v59 = vmul.f32 %v2368_v17, %v936_v58  ;;  %v948_v60 = vmul.f32 %v940_v20, %v936_v58  ;;  %v947_v61 = vmul.f32 %v939_v22, %v936_v58  ;;  %v946_v62 = vmul.f32 %v938_v25, %v936_v58 }
 0x132   : > { %1090 = vmatpush.msrb.mxu2 %v949_v59 }
 0x133   : > { %1407 = vmatpush.xpose.msk.msrb.mxu0 %vm818_vm0, %v943_v23 }
 0x134   : > { %1091 = vmatpush.msrb.mxu2 %v948_v60 }
 0x136   : > { %1092 = vmatpush.msrb.mxu2 %v947_v61 }
 0x137   : > { %1408 = vmatpush.xpose.msk.msrb.mxu0 %vm818_vm0, %v942_v27 }
 0x138   : > { %1093 = vmatpush.msrb.mxu2 %v946_v62 }
 0x13a   : > { %1409 = vmatmul.msk.f32.vlgmr.msrb.gmra.mxu0 %vm818_vm0, %v840_v28 }
 0x142   : > { %1410 = vmatmul.msk.f32.gmra.mxu0 %vm818_vm0, %v872_v31  ;;  %v1564_v31 = vld [vmem:[%s2519_s8] ss:$0 sm:$0xff] }
 0x1b7   : > { %v989_v33 = vpop.f32.mrf.mxu0 }
 0x1b8   : > { %v990_v34 = vadd.f32 %v1562_v32, %v989_v33 }
 0x1ba   : > { %v995_v35 = vsel %vm818_vm0, %v990_v34, -inf }
 0x1bb   : > { %996 = vmax.xlane.f32.xlu0 %v995_v35 }
 0x1bf   : > { %v992_v36 = vpop.f32.mrf.mxu0 }
 0x1c0   : > { %v993_v37 = vadd.f32 %v1562_v32, %v992_v36 }
 0x1c2   : > { %v998_v38 = vsel %vm818_vm0, %v993_v37, -inf }
 0x1c3   : > { %999 = vmax.xlane.f32.xlu0 %v998_v38 }
 0x22e   : > { %v997_v48 = vpop.xlane.xlu0 %996 }
 0x22f   : > { %v1001_v49 = vsub.f32 %v990_v34, %v997_v48 }
 0x231   : > { %v1003_v50 = vmul.f32 1.442695, %v1001_v49 }
 0x233   : > { %1565 = vpow2.f32 %v1003_v50 }
 0x236   : > { %v1000_v51 = vpop.xlane.xlu0 %999 }
 0x237   : > { %v1002_v52 = vsub.f32 %v993_v37, %v1000_v51 }
 0x239   : > { %v1566_v53 = vpop.eup %1565  ;;  %v1005_v54 = vmul.f32 1.442695, %v1002_v52 }
 0x23a   : > { %1411 = vmatmul.msk.f32.vlgmr.msrb.gmra.mxu1 %vm818_vm0, %v1566_v53 }
 0x23b   : > { %1567 = vpow2.f32 %v1005_v54 }
 0x241   : > { %v1568_v55 = vpop.eup %1567 }
 0x242   : > { %1412 = vmatmul.msk.f32.gmra.mxu1 %vm818_vm0, %v1568_v55 }
 0x2b7   : > { %v1034_v1 = vpop.f32.mrf.mxu1 }
 0x2b8   : > { %v1040_v3 = vmax.f32 %v1034_v1, 1e-30 }
 0x2ba   : > { %1569 = vrcp.f32 %v1040_v3  ;;  %v1053_v10 = vand.u32 2147483648, %v1040_v3  ;;  %v1051_v12 = vand.u32 2147483647, %v1040_v3  ;;  %vm1047_vm2 = vweird.f32 %v1040_v3 }
 0x2bc   : > { %v1054_v15 = vor.u32 1.1754944e-38, %v1053_v10  ;;  %vm1052_vm4 = vcmp.eq.f32.partialorder %v1051_v12, 8.507059e+37 }
 0x2bf   : > { %v1037_v5 = vpop.f32.mrf.mxu1 }
 0x2c0   : > { %v1570_v6 = vpop.eup %1569  ;;  %v1041_v7 = vmax.f32 %v1037_v5, 1e-30 }
 0x2c1   : > { %v1043_v8 = vmul.f32 %v1570_v6, %v1040_v3  ;;  %vm1048_vm1 = vweird.f32 %v1570_v6 }
 0x2c2   : > { %1571 = vrcp.f32 %v1041_v7  ;;  %vm1049_vm3 = vmor %vm1047_vm2, %vm1048_vm1  ;;  %v1067_v21 = vand.u32 2147483648, %v1041_v7  ;;  %v1065_v23 = vand.u32 2147483647, %v1041_v7  ;;  %vm1061_vm6 = vweird.f32 %v1041_v7 }
 0x2c3   : > { %v1044_v9 = vsub.f32 1.0, %v1043_v8 }
 0x2c4   : > { %v1068_v25 = vor.u32 1.1754944e-38, %v1067_v21  ;;  %vm1066_vm8 = vcmp.eq.f32.partialorder %v1065_v23, 8.507059e+37 }
 0x2c5   : > { %v1045_v11 = vmul.f32 %v1570_v6, %v1044_v9 }
 0x2c7   : > { %v1046_v13 = vadd.f32 %v1570_v6, %v1045_v11 }
 0x2c8   : > { %v1572_v14 = vpop.eup %1571 }
 0x2c9   : > { %v1057_v16 = vmul.f32 %v1572_v14, %v1041_v7  ;;  %v1050_v17 = vsel %vm1049_vm3, %v1570_v6, %v1046_v13  ;;  %vm1062_vm5 = vweird.f32 %v1572_v14 }
 0x2ca   : > { %v1055_v18 = vsel %vm1052_vm4, %v1054_v15, %v1050_v17  ;;  %vm1063_vm7 = vmor %vm1061_vm6, %vm1062_vm5 }
 0x2cb   : > { %v1058_v19 = vsub.f32 1.0, %v1057_v16  ;;  %v1070_v20 = vmul.f32 %v1566_v53, %v1055_v18 }
 0x2cd   : > { %1413 = vmatmul.msk.f32.vlgmr.msrb.gmra.mxu2 %vm818_vm0, %v1070_v20  ;;  %v1059_v22 = vmul.f32 %v1572_v14, %v1058_v19 }
 0x2cf   : > { %v1060_v24 = vadd.f32 %v1572_v14, %v1059_v22 }
 0x2d1   : > { %v1064_v26 = vsel %vm1063_vm7, %v1572_v14, %v1060_v24 }
 0x2d2   : > { %v1069_v27 = vsel %vm1066_vm8, %v1068_v25, %v1064_v26 }
 0x2d3   : > { %v1071_v28 = vmul.f32 %v1568_v55, %v1069_v27 }
 0x2d5   : > { %1414 = vmatmul.msk.f32.gmra.mxu2 %vm818_vm0, %v1071_v28 }
 0x350   : > { %v1095_v29 = vpop.f32.mrf.mxu2 }
 0x351   : > { %1415 = vmatmul.msk.f32.vlgmr.msrb.gmra.mxu3 %vm818_vm0, %v1095_v29 }
 0x358   : > { %v1098_v30 = vpop.f32.mrf.mxu2 }
 0x359   : > { %1416 = vmatmul.msk.f32.gmra.mxu3 %vm818_vm0, %v1098_v30 }
 0x3d4   : > { %v1132_v32 = vpop.f32.mrf.mxu3 }
 0x3d5   : > { %v1133_v33 = vadd.f32 %v1564_v31, %v1132_v32 }
 0x3d7   : > { %1138 = vst.msk [vmem:[%s805_s5] sm:$0xff] %vm818_vm0, %v1133_v33 }
 0x3dc   : > { %v1135_v34 = vpop.f32.mrf.mxu3 }
 0x3dd   : > { %v1136_v35 = vadd.f32 %v1564_v31, %v1135_v34 }
 0x3df   : > { %1139 = vst.msk [vmem:[%s805_s5 + $0x8] sm:$0xff] %vm818_vm0, %v1136_v35 }
 0x3e0   : > { %1930 = shalt.err (!%p1927_p13)
}
 0x3e1   : > { %s2004_s9 = smov 128   ;;  %s2005_s18 = smov 8  }
 0x3e2   : > { %1459 = dma.vmem_to_hbm [thread:$0]  (%p2191_p4), %s1154_s28, 256, %s1156_s10, %s1141_s23, %s2004_s9, %s2004_s9, %s2005_s18  }
 0x3e3 PF: > { %s2522_s24 = sld [smem:[#allocation29_spill]]  ;;  %p2524_p0 = scmp.ge.s32.totalorder %s1993_s27, 2 }
 0x3e5   : > { %p1497_p2 = pnand %p2524_p0, %p2195_p5 }
 0x3e7   : > { %p1498_p12 = pneg %p1497_p2 }
 0x3e9   : > { %s1170_s8 = sand.u32 1, %s2522_s24  }
 0x3ea   : > { %s1171_s14 = scalar_lea.sflag [#allocation4], %s1170_s8 }
 0x3eb   : > { %1976 = dma.done.wait (%p1498_p12), %s1171_s14, 256  }
 0x3ec   : > { %1978 = vsyncadd (%p1498_p12), %s1171_s14, 4294967040  ;;  %s2525_s27 = sld [smem:[#allocation30_spill]]  ;;  %s2527_s24 = smov %s1985_s25 }
 0x3ed   : > { %s2526_s0 = sld [smem:[#allocation31_spill]]  ;;  %s2528_s25 = smov %s1989_s26 }
 0x3f2   : > { %p39_p1 = scmp.ge.s32.totalorder %s2525_s27, 4  }
 0x3f3   : > { %s2529_s26 = smov %s2526_s0 }
 0x3f4   :  { %41 = sbr.rel (!%p39_p1) target bundleno = 26 (0x1a), region = 201 }
 0x3f9   :  { %1177 = vsyncpa [#allocation3], 1 }
 0x3fa   :  { %1179 = vsyncpa [#allocation3 + $0x1], 1 }
 0x3fb   :  { %1180 = vsyncpa [#allocation6], 1 }
 0x3fc   :  { %1182 = vsyncpa [#allocation6 + $0x1], 1 }
 0x3fd   :  { %1183 = vsyncpa [#allocation9], 1 }
 0x3fe   :  { %1185 = vsyncpa [#allocation9 + $0x1], 1 }
 0x3ff   :  { %1186 = vsyncpa [#allocation12], 1 }
 0x400   :  { %1187 = vsyncpa [#allocation15], 1 }
 0x401   :  { %1188 = vsyncpa [#allocation18], 1 }
 0x402   :  { %1189 = vsyncpa [#allocation4], 1 }
 0x403   :  { %1191 = vsyncpa [#allocation4 + $0x1], 1 }

</bundles_post_ra>
